<compile_context>
chip_gen: v7x
topology: tpu7x:2x2x1
jax: 0.10.0
libtpu: 0.0.40
codegen_flags: <defaults>
</compile_context>

<pallas_src>
import jax
import jax.numpy as jnp
from jax.experimental import pallas as pl
from jax.experimental.pallas import tpu as pltpu

FILTER_SIZES = (2, 3, 4)


def _round_up(x, m):
    return ((x + m - 1) // m) * m


def _default_epilogue_dtype():
    # bf16 VPU exists on v6e/v7x; v5e (and older) lack it -> keep the epilogue f32.
    try:
        kind = jax.devices()[0].device_kind.lower()
    except Exception:
        kind = ""
    if any(tag in kind for tag in ("v2", "v3", "v4", "v5")):
        return jnp.float32
    return jnp.bfloat16


def textcnn_kernel(a_ref, w_ref, bconv_ref, mask_ref, fcw_ref, fcb_ref, out_ref):
    # a_ref    : (TB, S, kmax*D)  bf16   im2col'd activations (lane-dense, K = kmax*D)
    # w_ref    : (kmax*D, Npad)   bf16   packed conv weights (tap-major rows)
    # bconv_ref: (1, Npad)        ep     conv bias        (ep = epilogue dtype)
    # mask_ref : (S, Npad)        ep     1 = valid conv position, 0 = invalid
    # fcw_ref  : (Npad, Cpad)     bf16   fc weight (pre-transposed)
    # fcb_ref  : (1, Cpad)        f32    fc bias
    # out_ref  : (TB, Cpad)       f32
    TB = a_ref.shape[0]
    S = a_ref.shape[1]
    K = a_ref.shape[2]
    ep = bconv_ref.dtype

    # Layout-free collapse: last dim (128 lanes) untouched.
    a = a_ref[...].reshape(TB * S, K)                                        # (TB*S, K) bf16

    # One MXU pass covers all taps and all filter-size groups (f32 accumulation).
    scores = jnp.dot(a, w_ref[...], preferred_element_type=jnp.float32)     # (TB*S, Npad) f32
    scores = scores.astype(ep)                                               # bf16 epilogue on v6e/v7x
    scores = jnp.maximum(scores + bconv_ref[...], 0)                         # bias + ReLU
    scores = scores.reshape(TB, S, -1) * mask_ref[...][None]                 # kill invalid t (>= 0 invariant)
    pooled = jnp.max(scores, axis=1)                                         # (TB, Npad) max-over-time

    out_ref[...] = (jnp.dot(pooled.astype(jnp.bfloat16), fcw_ref[...],
                            preferred_element_type=jnp.float32)
                    + fcb_ref[...])                                          # (TB, Cpad) f32


def textcnn_forward(token_ids, params, *, tb_max=512, epilogue_dtype=None):
    """token_ids: (B, S) int32 == PyTorch `text[0]`."""
    filter_sizes = FILTER_SIZES
    kmax = max(filter_sizes)
    B, S = token_ids.shape
    assert S >= kmax, "sequence must be at least max(filter_sizes)"

    if epilogue_dtype is None:
        epilogue_dtype = _default_epilogue_dtype()

    emb_tbl = params["embedding"]
    D = emb_tbl.shape[1]
    F = params["conv_w"][0].shape[0]
    C = params["fc_b"].shape[0]
    NF = F * len(filter_sizes)
    K = kmax * D                         # contraction dim of the packed conv matmul

    N_pad = _round_up(NF, 128)           # lane-dense conv/pooled feature width
    C_pad = _round_up(C, 128)            # lane-dense output width

    # ---- batch blocking: big TB to amortize ~0.35 us/step overhead, but keep ----
    # ---- >= 2 grid steps for large B so v7x megacore can shard the batch axis ----
    if B < 16:
        TB = B                           # block == full array (no (8,128) issue)
    else:
        TB = min(tb_max, _round_up(pl.cdiv(B, 2), 8))
    B_pad = pl.cdiv(B, TB) * TB

    # ---- embedding gather (XLA) + bf16 cast + zero padding + WRAPPER-SIDE im2col ----
    # Row (b, t) of `a` holds [emb[b,t], emb[b,t+1], ..., emb[b,t+kmax-1]]  (K = kmax*D lanes).
    # Tail taps that read the zero padding are either multiplied by zero weight rows
    # (groups with k < kmax) or masked out before the max, so zeros are safe.
    emb = jnp.take(emb_tbl, token_ids, axis=0).astype(jnp.bfloat16)              # (B, S, D)
    emb = jnp.pad(emb, ((0, B_pad - B), (0, kmax - 1), (0, 0)))                  # (B_pad, S+kmax-1, D)
    a = jnp.concatenate([emb[:, j:j + S, :] for j in range(kmax)], axis=-1)      # (B_pad, S, K)

    # ---- pack conv weights: row j*D+d, col g*F+f  <-  conv_w[g][f, j, d] ----
    w_packed = jnp.zeros((K, N_pad), jnp.float32)
    bconv = jnp.zeros((1, N_pad), jnp.float32)
    mask = jnp.zeros((S, N_pad), jnp.float32)
    for g, k in enumerate(filter_sizes):
        wg = params["conv_w"][g]                                    # (F, k, D)
        blk = jnp.transpose(wg, (1, 2, 0)).reshape(k * D, F)        # tap-major (k*D, F)
        w_packed = w_packed.at[: k * D, g * F:(g + 1) * F].set(blk)
        bconv = bconv.at[0, g * F:(g + 1) * F].set(params["conv_b"][g])
        mask = mask.at[: S - k + 1, g * F:(g + 1) * F].set(1.0)     # valid conv positions
    w_packed = w_packed.astype(jnp.bfloat16)
    bconv = bconv.astype(epilogue_dtype)
    mask = mask.astype(epilogue_dtype)

    # ---- pack fc (PyTorch Linear: out = x @ W.T + b); bf16 MXU input ----
    fcw_packed = (jnp.zeros((N_pad, C_pad), jnp.float32)
                  .at[:NF, :C].set(params["fc_w"].T).astype(jnp.bfloat16))
    fcb_packed = jnp.zeros((1, C_pad), jnp.float32).at[0, :C].set(params["fc_b"])

    grid = (B_pad // TB,)

    flops = 2 * B_pad * S * K * N_pad + 2 * B_pad * N_pad * C_pad
    bytes_accessed = (a.size * 2 + w_packed.size * 2 + bconv.size * bconv.dtype.itemsize
                      + mask.size * mask.dtype.itemsize + fcw_packed.size * 2
                      + fcb_packed.size * 4 + B_pad * C_pad * 4)

    out = pl.pallas_call(
        textcnn_kernel,
        out_shape=jax.ShapeDtypeStruct((B_pad, C_pad), jnp.float32),
        grid=grid,
        in_specs=[
            pl.BlockSpec((TB, S, K), lambda i: (i, 0, 0)),
            pl.BlockSpec(w_packed.shape, lambda i: (0, 0)),
            pl.BlockSpec(bconv.shape, lambda i: (0, 0)),
            pl.BlockSpec(mask.shape, lambda i: (0, 0)),
            pl.BlockSpec(fcw_packed.shape, lambda i: (0, 0)),
            pl.BlockSpec(fcb_packed.shape, lambda i: (0, 0)),
        ],
        out_specs=pl.BlockSpec((TB, C_pad), lambda i: (i, 0)),
        compiler_params=pltpu.CompilerParams(
            dimension_semantics=("parallel",),
            vmem_limit_bytes=32 * 1024 * 1024,
        ),
        cost_estimate=pl.CostEstimate(flops=flops, transcendentals=0,
                                      bytes_accessed=bytes_accessed),
    )(a, w_packed, bconv, mask, fcw_packed, fcb_packed)

    return out[:B, :C]                                              # (B, C)


def init_params(key, vocab_size, embed_dim, num_class, num_filters=3,
                filter_sizes=FILTER_SIZES):
    ks = jax.random.split(key, 4 + 2 * len(filter_sizes))
    params = {
        "embedding": 0.1 * jax.random.normal(ks[0], (vocab_size, embed_dim), jnp.float32),
        "conv_w": [],
        "conv_b": [],
        "fc_w": 0.1 * jax.random.normal(ks[1], (num_class, num_filters * len(filter_sizes)),
                                        jnp.float32),
        "fc_b": 0.01 * jax.random.normal(ks[2], (num_class,), jnp.float32),
    }
    for i, k in enumerate(filter_sizes):
        params["conv_w"].append(
            0.1 * jax.random.normal(ks[3 + 2 * i], (num_filters, k, embed_dim), jnp.float32))
        params["conv_b"].append(
            0.01 * jax.random.normal(ks[4 + 2 * i], (num_filters,), jnp.float32))
    return params


def reference_forward(token_ids, params):
    """Pure-JAX f32 reference mirroring the PyTorch semantics (NCHW Conv2d)."""
    emb = jnp.take(params["embedding"], token_ids, axis=0)      # (B, S, D)
    x = emb[:, None, :, :]                                      # (B, 1, S, D)  NCHW
    feats = []
    for i, k in enumerate(FILTER_SIZES):
        w = params["conv_w"][i][:, None, :, :]                  # (F, 1, k, D)  OIHW
        b = params["conv_b"][i]
        y = jax.lax.conv_general_dilated(
            x, w, window_strides=(1, 1), padding="VALID",
            dimension_numbers=("NCHW", "OIHW", "NCHW"))         # (B, F, S-k+1, 1)
        y = jax.nn.relu(y + b[None, :, None, None])
        feats.append(jnp.max(y[:, :, :, 0], axis=2))            # (B, F)
    out = jnp.concatenate(feats, axis=1)                        # (B, 3F)
    return out @ params["fc_w"].T + params["fc_b"]              # (B, C)


if __name__ == "__main__":
    VOCAB, EMBED_DIM, NUM_CLASS = 50, 32, 4
    B, S = 2, 16

    key = jax.random.PRNGKey(0)
    k_ids, k_len, k_params = jax.random.split(key, 3)
    token_ids = jax.random.randint(k_ids, (B, S), 0, VOCAB, dtype=jnp.int32)
    lengths = jnp.full((B,), S, jnp.int32)
    text = (token_ids, lengths)          # mirrors `text[0]` indexing in the PyTorch forward

    params = init_params(k_params, VOCAB, EMBED_DIM, NUM_CLASS)

    out = jax.block_until_ready(textcnn_forward(text[0], params))
    ref = jax.block_until_ready(reference_forward(text[0], params))

    assert out.shape == (B, NUM_CLASS), out.shape
    # bf16 MXU inputs / bf16 epilogue with f32 accumulation -> relaxed tolerance vs f32 ref
    assert jnp.allclose(out, ref, atol=1e-2, rtol=1e-2), (out, ref)
    print("KERNEL_OK")
</pallas_src>

<mosaic_0001>
module attributes {stable_mosaic.version = 11 : i64} {
  func.func @textcnn_kernel(%arg0: i32, %arg1: memref<2x16x128xbf16, #tpu.memory_space<vmem>>, %arg2: memref<128x128xbf16, #tpu.memory_space<vmem>>, %arg3: memref<1x128xbf16, #tpu.memory_space<vmem>>, %arg4: memref<16x128xbf16, #tpu.memory_space<vmem>>, %arg5: memref<128x128xbf16, #tpu.memory_space<vmem>>, %arg6: memref<1x128xf32, #tpu.memory_space<vmem>>, %arg7: memref<2x128xf32, #tpu.memory_space<vmem>>) attributes {dimension_semantics = [#tpu.dimension_semantics<parallel>], iteration_bounds = array<i64: 1>, scalar_prefetch = 0 : i64, scratch_operands = 0 : i64, tpu.core_type = #tpu.core_type<tc>, window_params = [{transform_indices = @transform_0, window_bounds = array<i64: 2, 16, 128>}, {pipeline_mode = #tpu.pipeline_mode<synchronous>, transform_indices = @transform_1, window_bounds = array<i64: 128, 128>}, {pipeline_mode = #tpu.pipeline_mode<synchronous>, transform_indices = @transform_2, window_bounds = array<i64: 1, 128>}, {pipeline_mode = #tpu.pipeline_mode<synchronous>, transform_indices = @transform_3, window_bounds = array<i64: 16, 128>}, {pipeline_mode = #tpu.pipeline_mode<synchronous>, transform_indices = @transform_4, window_bounds = array<i64: 128, 128>}, {pipeline_mode = #tpu.pipeline_mode<synchronous>, transform_indices = @transform_5, window_bounds = array<i64: 1, 128>}, {transform_indices = @transform_6, window_bounds = array<i64: 2, 128>}]} {
    %c0 = arith.constant 0 : index
    %c0_0 = arith.constant 0 : index
    %c0_1 = arith.constant 0 : index
    %0 = vector.load %arg1[%c0, %c0_0, %c0_1] : memref<2x16x128xbf16, #tpu.memory_space<vmem>>, vector<2x16x128xbf16>
    %1 = vector.shape_cast %0 : vector<2x16x128xbf16> to vector<32x128xbf16>
    %c0_2 = arith.constant 0 : index
    %c0_3 = arith.constant 0 : index
    %2 = vector.load %arg2[%c0_2, %c0_3] : memref<128x128xbf16, #tpu.memory_space<vmem>>, vector<128x128xbf16>
    %cst = arith.constant dense<0.000000e+00> : vector<32x128xf32>
    %3 = tpu.matmul %1, %2, %cst {dimension_numbers = #tpu.dot_dimension_numbers<[1], [0], [0], [1], [0, 0, 1, 1], [], []>} : vector<32x128xbf16>, vector<128x128xbf16>, vector<32x128xf32> -> vector<32x128xf32>
    %4 = arith.truncf %3 : vector<32x128xf32> to vector<32x128xbf16>
    %c0_4 = arith.constant 0 : index
    %c0_5 = arith.constant 0 : index
    %5 = vector.load %arg3[%c0_4, %c0_5] : memref<1x128xbf16, #tpu.memory_space<vmem>>, vector<1x128xbf16>
    %6 = vector.broadcast %5 : vector<1x128xbf16> to vector<32x128xbf16>
    %7 = arith.addf %4, %6 : vector<32x128xbf16>
    %cst_6 = arith.constant 0.000000e+00 : bf16
    %8 = vector.broadcast %cst_6 : bf16 to vector<32x128xbf16>
    %9 = arith.maximumf %7, %8 : vector<32x128xbf16>
    %10 = vector.shape_cast %9 : vector<32x128xbf16> to vector<2x16x128xbf16>
    %c0_7 = arith.constant 0 : index
    %c0_8 = arith.constant 0 : index
    %11 = vector.load %arg4[%c0_7, %c0_8] : memref<16x128xbf16, #tpu.memory_space<vmem>>, vector<16x128xbf16>
    %12 = vector.shape_cast %11 : vector<16x128xbf16> to vector<1x16x128xbf16>
    %13 = vector.broadcast %12 : vector<1x16x128xbf16> to vector<2x16x128xbf16>
    %14 = arith.mulf %10, %13 : vector<2x16x128xbf16>
    %cst_9 = arith.constant dense<0xFF80> : vector<2x128xbf16>
    %15 = vector.multi_reduction <maximumf>, %14, %cst_9 [1] : vector<2x16x128xbf16> to vector<2x128xbf16>
    %c0_10 = arith.constant 0 : index
    %c0_11 = arith.constant 0 : index
    %16 = vector.load %arg5[%c0_10, %c0_11] : memref<128x128xbf16, #tpu.memory_space<vmem>>, vector<128x128xbf16>
    %cst_12 = arith.constant dense<0.000000e+00> : vector<2x128xf32>
    %17 = tpu.matmul %15, %16, %cst_12 {dimension_numbers = #tpu.dot_dimension_numbers<[1], [0], [0], [1], [0, 0, 1, 1], [], []>} : vector<2x128xbf16>, vector<128x128xbf16>, vector<2x128xf32> -> vector<2x128xf32>
    %c0_13 = arith.constant 0 : index
    %c0_14 = arith.constant 0 : index
    %18 = vector.load %arg6[%c0_13, %c0_14] : memref<1x128xf32, #tpu.memory_space<vmem>>, vector<1x128xf32>
    %19 = vector.broadcast %18 : vector<1x128xf32> to vector<2x128xf32>
    %20 = arith.addf %17, %19 : vector<2x128xf32>
    %c0_15 = arith.constant 0 : index
    %c0_16 = arith.constant 0 : index
    %21 = vector.load %arg7[%c0_15, %c0_16] : memref<2x128xf32, #tpu.memory_space<vmem>>, vector<2x128xf32>
    tpu.vector_store %arg7[%c0_15, %c0_16], %20 {strides = array<i32>} : memref<2x128xf32, #tpu.memory_space<vmem>>, vector<2x128xf32>,
    return
  }
  func.func @transform_0(%arg0: i32) -> (i32, i32, i32) {
    %c0_i32 = arith.constant 0 : i32
    %c0_i32_0 = arith.constant 0 : i32
    %c0_i32_1 = arith.constant 0 : i32
    return %arg0, %c0_i32, %c0_i32_0 : i32, i32, i32
  }
  func.func @transform_1(%arg0: i32) -> (i32, i32) {
    %c0_i32 = arith.constant 0 : i32
    %c0_i32_0 = arith.constant 0 : i32
    %c0_i32_1 = arith.constant 0 : i32
    return %c0_i32, %c0_i32_0 : i32, i32
  }
  func.func @transform_2(%arg0: i32) -> (i32, i32) {
    %c0_i32 = arith.constant 0 : i32
    %c0_i32_0 = arith.constant 0 : i32
    %c0_i32_1 = arith.constant 0 : i32
    return %c0_i32, %c0_i32_0 : i32, i32
  }
  func.func @transform_3(%arg0: i32) -> (i32, i32) {
    %c0_i32 = arith.constant 0 : i32
    %c0_i32_0 = arith.constant 0 : i32
    %c0_i32_1 = arith.constant 0 : i32
    return %c0_i32, %c0_i32_0 : i32, i32
  }
  func.func @transform_4(%arg0: i32) -> (i32, i32) {
    %c0_i32 = arith.constant 0 : i32
    %c0_i32_0 = arith.constant 0 : i32
    %c0_i32_1 = arith.constant 0 : i32
    return %c0_i32, %c0_i32_0 : i32, i32
  }
  func.func @transform_5(%arg0: i32) -> (i32, i32) {
    %c0_i32 = arith.constant 0 : i32
    %c0_i32_0 = arith.constant 0 : i32
    %c0_i32_1 = arith.constant 0 : i32
    return %c0_i32, %c0_i32_0 : i32, i32
  }
  func.func @transform_6(%arg0: i32) -> (i32, i32) {
    %c0_i32 = arith.constant 0 : i32
    %c0_i32_0 = arith.constant 0 : i32
    return %arg0, %c0_i32 : i32, i32
  }
}

</mosaic_0001>

<bundles_post_ra>
// kernel: tpu_custom_call.1
= control target key start
LH: loop header
LB: loop body
LE: loop exit
PB: predicated region body
PF: predicated region fallthrough
CT: control target
= control target key end

     0   :  { %11 = vsyncpa [#allocation3], 0  ;;  %s693_s0 = inlined_call_operand.hbm [shape: bf16[2,16,128], index: 0, kind: input, shape index: {}]   ;;  %s694_s1 = inlined_call_operand.hbm [shape: bf16[128,128], index: 1, kind: input, shape index: {}]   ;;  %s695_s2 = inlined_call_operand.vmem [shape: bf16[1,128], index: 2, kind: input, shape index: {}]   ;;  %s696_s3 = inlined_call_operand.vmem [shape: bf16[16,128], index: 3, kind: input, shape index: {}]   ;;  %s697_s4 = inlined_call_operand.hbm [shape: bf16[128,128], index: 4, kind: input, shape index: {}]   ;;  %s698_s5 = inlined_call_operand.vmem [shape: f32[1,128], index: 5, kind: input, shape index: {}]   ;;  %s699_s6 = inlined_call_operand.hbm [shape: f32[2,128], index: 6, kind: output, shape index: {}]  }
   0x1   :  { %12 = vsyncpa [#allocation6], 0 }
   0x2   :  { %13 = vsyncpa [#allocation4], 0  ;;  %s576_s21 = smov [#allocation5]   ;;  %s577_s23 = smov [#allocation2]  }
   0x3   :  { %s31_s22 = sshll.u32 %s576_s21, 4  ;;  %s19_s24 = sshll.u32 %s577_s23, 4  ;;  %s32_s22 = int_to_ptr.vmem [resolvable:$true] %s31_s22  ;;  %s620_s24 = int_to_ptr.vmem [resolvable:$true] %s19_s24 }
   0x4   :  { %s482_s27 = scalar_lea.hbm %s694_s1, 1024 }
   0x5   :  { %p483_p0 = scmp.ne.s32.totalorder %s694_s1, %s482_s27  ;;  %p486_p1 = scmp.lt.u32.totalorder %s482_s27, %s694_s1 }
   0x7   :  { %p488_p2 = pnand %p486_p1, %p483_p0 }
   0x9   :  { %491 = shalt.err (!%p488_p2)
}
   0xa   :  { %s492_s8 = scalar_lea.vmem %s32_s22, 1024  ;;  %p497_p4 = scmp.lt.s32.totalorder %s32_s22, %s32_s22 }
   0xb   :  { %p493_p3 = scmp.ne.s32.totalorder %s32_s22, %s492_s8  ;;  %p498_p5 = scmp.lt.s32.totalorder %s492_s8, %s492_s8 }
   0xd   :  { %p499_p6 = por %p498_p5, %p497_p4 }
   0xf   :  { %p500_p7 = pnand %p499_p6, %p493_p3 }
  0x11   :  { %503 = shalt.err (!%p500_p7)
}
  0x12   :  { %s578_s9 = smov 64   ;;  %s579_s10 = smov 4  }
  0x13   :  { %37 = dma.hbm_to_vmem [thread:$0]  %s694_s1, 1024, %s32_s22, [#allocation6], %s578_s9, %s578_s9, %s579_s10  }
  0x14   :  { %s504_s15 = scalar_lea.hbm %s693_s0, 256 }
  0x15   :  { %p505_p8 = scmp.ne.s32.totalorder %s693_s0, %s504_s15  ;;  %p508_p9 = scmp.lt.u32.totalorder %s504_s15, %s693_s0 }
  0x17   :  { %p510_p10 = pnand %p508_p9, %p505_p8 }
  0x19   :  { %513 = shalt.err (!%p510_p10)
}
  0x1a   :  { %s514_s20 = scalar_lea.vmem %s620_s24, 256  ;;  %p519_p12 = scmp.lt.s32.totalorder %s620_s24, %s620_s24 }
  0x1b   :  { %p515_p11 = scmp.ne.s32.totalorder %s620_s24, %s514_s20  ;;  %p520_p13 = scmp.lt.s32.totalorder %s514_s20, %s514_s20 }
  0x1d   :  { %p521_p0 = por %p520_p13, %p519_p12 }
  0x1f   :  { %p522_p1 = pnand %p521_p0, %p515_p11 }
  0x21   :  { %525 = shalt.err (!%p522_p1)
}
  0x22   :  { %25 = dma.hbm_to_vmem [thread:$0]  %s693_s0, 256, %s620_s24, [#allocation3], %s578_s9, %s578_s9, %s579_s10  }
  0x23   :  { %s580_s22 = smov [#allocation7]   ;;  %s526_s27 = scalar_lea.hbm %s697_s4, 1024 }
  0x24   :  { %s47_s23 = sshll.u32 %s580_s22, 4  ;;  %p527_p2 = scmp.ne.s32.totalorder %s697_s4, %s526_s27  ;;  %s48_s23 = int_to_ptr.vmem [resolvable:$true] %s47_s23 }
  0x25   :  { %p530_p3 = scmp.lt.u32.totalorder %s526_s27, %s697_s4 }
  0x27   :  { %p532_p4 = pnand %p530_p3, %p527_p2 }
  0x29   :  { %535 = shalt.err (!%p532_p4)
}
  0x2a   :  { %s536_s8 = scalar_lea.vmem %s48_s23, 1024  ;;  %p541_p6 = scmp.lt.s32.totalorder %s48_s23, %s48_s23 }
  0x2b   :  { %p537_p5 = scmp.ne.s32.totalorder %s48_s23, %s536_s8  ;;  %p542_p7 = scmp.lt.s32.totalorder %s536_s8, %s536_s8 }
  0x2d   :  { %p543_p8 = por %p542_p7, %p541_p6 }
  0x2f   :  { %p544_p9 = pnand %p543_p8, %p537_p5 }
  0x31   :  { %547 = shalt.err (!%p544_p9)
}
  0x32   :  { %53 = dma.hbm_to_vmem [thread:$0]  %s697_s4, 1024, %s48_s23, [#allocation6], %s578_s9, %s578_s9, %s579_s10  }
  0x33   :  { %570 = dma.done.wait [#allocation3], 256  }
  0x34   :  { %571 = vsyncadd [#allocation3], 4294967040 }
  0x35   :  { %572 = dma.done.wait [#allocation6], 2048  }
  0x36   :  { %573 = vsyncadd [#allocation6], 4294965248  ;;  %v463_v0 = vld [vmem:[#allocation5] sm:$0xff]   ;;  %v464_v1 = vld [vmem:[#allocation5 + $0x8] sm:$0xff]   ;;  %v581_v11 = vmov 0.0   ;;  %vm582_vm0 = vmmov 0   ;;  %v201_v19 = vlaneseq }
  0x37   :  { %414 = vmatprep.subr.bf16.mxu0 %v463_v0  ;;  %v465_v2 = vld [vmem:[#allocation5 + $0x10] sm:$0xff]   ;;  %v466_v3 = vld [vmem:[#allocation5 + $0x18] sm:$0xff]   ;;  %v467_v5 = vld [vmem:[#allocation5 + $0x20] sm:$0xff]   ;;  %434 = vmatprep.subr.bf16.mxu1 %v581_v11  ;;  %v583_v34 = vmov 0   ;;  %vm266_vm1 = vcmask 1041409   ;;  %s584_s12 = smov [#allocation8]  }
  0x38   :  { %415 = vmatpush3.bf16.msra.mxu0 %v463_v0  ;;  %v471_v4 = vld [vmem:[#allocation2] sm:$0xff]   ;;  %v468_v6 = vld [vmem:[#allocation5 + $0x28] sm:$0xff]   ;;  %v470_v8 = vld [vmem:[#allocation5 + $0x38] sm:$0xff]   ;;  %450 = vmatprep.mubr.msk.bf16.mxu1 %vm582_vm0, %v581_v11  ;;  %v202_v20 = vshrl.u32 %v201_v19, 7  ;;  %s365_s13 = sshll.u32 %s584_s12, 4  ;;  %s366_s13 = int_to_ptr.vmem [resolvable:$true] %s365_s13 }
  0x39   :  { %416 = vmatprep.subr.bf16.mxu0 %v464_v1  ;;  %430 = vmatprep.mubr.bf16.mxu0 %v471_v4  ;;  %v469_v7 = vld [vmem:[#allocation5 + $0x30] sm:$0xff]   ;;  %v472_v9 = vld [vmem:[#allocation2 + $0x8] sm:$0xff]   ;;  %v474_v10 = vld [vmem:[#allocation7] sm:$0xff]   ;;  %s548_s14 = scalar_lea.vmem %s366_s13, 32  ;;  %p553_p11 = scmp.lt.s32.totalorder %s366_s13, %s366_s13 }
  0x3a   :  { %435 = vmatpush3.bf16.msra.mxu1 %v474_v10  ;;  %v475_v12 = vld [vmem:[#allocation7 + $0x8] sm:$0xff]   ;;  %v476_v13 = vld [vmem:[#allocation7 + $0x10] sm:$0xff]   ;;  %v477_v14 = vld [vmem:[#allocation7 + $0x18] sm:$0xff]   ;;  %v203_v23 = vsub.s32 0, %v202_v20  ;;  %p549_p10 = scmp.ne.s32.totalorder %s366_s13, %s548_s14  ;;  %p554_p12 = scmp.lt.s32.totalorder %s548_s14, %s548_s14 }
  0x3b   :  { %436 = vmatprep.subr.bf16.mxu1 %v581_v11  ;;  %v478_v15 = vld [vmem:[#allocation7 + $0x20] sm:$0xff]   ;;  %v479_v16 = vld [vmem:[#allocation7 + $0x28] sm:$0xff]   ;;  %v480_v17 = vld [vmem:[#allocation7 + $0x30] sm:$0xff]  }
  0x3c   :  { %417 = vmatpush3.bf16.msra.mxu0 %v464_v1  ;;  %v481_v18 = vld [vmem:[#allocation7 + $0x38] sm:$0xff]   ;;  %v197_v21 = vld [vmem:[%s695_s2] sm:$0x1]  ;;  %p555_p13 = por %p554_p12, %p553_p11 }
  0x3d   :  { %418 = vmatprep.subr.bf16.mxu0 %v465_v2  ;;  %v199_v22 = vpack.i.b16 %v197_v21, %v197_v21  ;;  %v473_v32 = vld [vmem:[%s696_s3] sm:$0xff]  }
  0x3e   :  { %437 = vmatpush3.bf16.msra.mxu1 %v475_v12  ;;  %v386_v63 = vld [vmem:[%s698_s5] ss:$0 sm:$0xff]  ;;  %p556_p0 = pnand %p555_p13, %p549_p10 }
  0x3f   :  { %438 = vmatprep.subr.bf16.mxu1 %v581_v11  ;;  %v204_v26 = vrot.slane %v199_v22, %v203_v23 }
  0x40   :  { %419 = vmatpush3.bf16.msra.mxu0 %v465_v2 }
  0x41   :  { %420 = vmatprep.subr.bf16.mxu0 %v466_v3 }
  0x42   :  { %439 = vmatpush3.bf16.msra.mxu1 %v476_v13 }
  0x43   :  { %440 = vmatprep.subr.bf16.mxu1 %v581_v11 }
  0x44   :  { %421 = vmatpush3.bf16.msra.mxu0 %v466_v3 }
  0x45   :  { %422 = vmatprep.subr.bf16.mxu0 %v467_v5 }
  0x46   :  { %441 = vmatpush3.bf16.msra.mxu1 %v477_v14 }
  0x47   :  { %442 = vmatprep.subr.bf16.mxu1 %v581_v11 }
  0x48   :  { %423 = vmatpush3.bf16.msra.mxu0 %v467_v5 }
  0x49   :  { %424 = vmatprep.subr.bf16.mxu0 %v468_v6 }
  0x4a   :  { %443 = vmatpush3.bf16.msra.mxu1 %v478_v15 }
  0x4b   :  { %444 = vmatprep.subr.bf16.mxu1 %v581_v11 }
  0x4c   :  { %425 = vmatpush3.bf16.msra.mxu0 %v468_v6 }
  0x4d   :  { %426 = vmatprep.subr.bf16.mxu0 %v469_v7 }
  0x4e   :  { %445 = vmatpush3.bf16.msra.mxu1 %v479_v16 }
  0x4f   :  { %446 = vmatprep.subr.bf16.mxu1 %v581_v11 }
  0x50   :  { %427 = vmatpush3.bf16.msra.mxu0 %v469_v7 }
  0x51   :  { %428 = vmatprep.subr.bf16.mxu0 %v470_v8 }
  0x52   :  { %447 = vmatpush3.bf16.msra.mxu1 %v480_v17 }
  0x53   :  { %448 = vmatprep.subr.bf16.mxu1 %v581_v11 }
  0x54   :  { %429 = vmatpush3.bf16.msra.mxu0 %v470_v8 }
  0x56   :  { %449 = vmatpush3.bf16.msra.mxu1 %v481_v18 }
  0x57   :  { %431 = vmatmul.mubr.bf16.vlgmr.msra.gmra.mrb[0].mxu0 %v472_v9 }
 0x12a   :  { %v432_v24 = vpop.f32.mrb[0].mxu0 }
 0x12b   :  { %v180_v25 = vpop.f32.mrb[1].mxu0 }
 0x12c   :  { %v433_v27 = vpop.f32.mrb[2].mxu0 }
 0x12d   :  { %v196_v28 = vpack.c.bf16 %v433_v27, %v432_v24  ;;  %v183_v29 = vpop.f32.mrb[3].mxu0 }
 0x12e   :  { %v195_v30 = vpack.c.bf16 %v183_v29, %v180_v25 }
 0x12f   :  { %v206_v31 = vadd.bf16 %v204_v26, %v196_v28 }
 0x130   :  { %v205_v33 = vadd.bf16 %v204_v26, %v195_v30 }
 0x131   :  { %v208_v35 = vmax.bf16 %v583_v34, %v206_v31 }
 0x132   :  { %v207_v36 = vmax.bf16 %v583_v34, %v205_v33 }
 0x133   :  { %v218_v37 = vmul.bf16 %v473_v32, %v208_v35 }
 0x134   :  { %v217_v38 = vmul.bf16 %v473_v32, %v207_v36 }
 0x135   :  { %v229_v39 = vunpack.i.l.bf16 %v218_v37  ;;  %v230_v40 = vunpack.i.h.bf16 %v218_v37 }
 0x136   :  { %v219_v41 = vunpack.i.l.bf16 %v217_v38  ;;  %v220_v42 = vunpack.i.h.bf16 %v217_v38 }
 0x137   :  { %v231_v43 = vmax.f32 %v229_v39, %v230_v40 }
 0x138   :  { %v221_v44 = vmax.f32 %v219_v41, %v220_v42 }
 0x139   :  { %v232_v45 = vrot.slane %v231_v43, 4 }
 0x13a   :  { %v222_v46 = vrot.slane %v221_v44, 4 }
 0x13b   :  { %v233_v47 = vmax.f32 %v231_v43, %v232_v45 }
 0x13c   :  { %v223_v48 = vmax.f32 %v221_v44, %v222_v46 }
 0x13d   :  { %v234_v49 = vrot.slane %v233_v47, 2 }
 0x13e   :  { %v224_v50 = vrot.slane %v223_v48, 2 }
 0x13f   :  { %v235_v51 = vmax.f32 %v233_v47, %v234_v49 }
 0x140   :  { %v225_v52 = vmax.f32 %v223_v48, %v224_v50 }
 0x141   :  { %v236_v53 = vrot.slane %v235_v51, 1 }
 0x142   :  { %v226_v54 = vrot.slane %v225_v52, 1 }
 0x143   :  { %v237_v55 = vmax.f32 %v235_v51, %v236_v53 }
 0x144   :  { %v227_v56 = vmax.f32 %v225_v52, %v226_v54 }
 0x145   :  { %v238_v57 = vpack.i.bf16 %v237_v55, %v237_v55 }
 0x146   :  { %v228_v58 = vpack.i.bf16 %v227_v56, %v227_v56 }
 0x147   :  { %v265_v59 = vunpack.c.l.b16 %v238_v57 }
 0x148   :  { %v264_v60 = vunpack.c.l.b16 %v228_v58 }
 0x14a   :  { %v267_v61 = vsel %vm266_vm1, %v265_v59, %v264_v60 }
 0x14b   :  { %v268_v62 = vpack.c.b16 %v267_v61, %v267_v61 }
 0x14d   :  { %451 = vmatmul.mubr.bf16.vlgmr.msra.gmra.mrb[0].mxu1 %v268_v62 }
 0x220   :  { %v352_v0 = vpop.f32.mrb[0].mxu1 }
 0x221   :  { %v353_v1 = vadd.f32 %v386_v63, %v352_v0  ;;  %v452_v2 = vpop.f32.mrb[1].mxu1 }
 0x222   :  { %v355_v3 = vpop.f32.mrb[2].mxu1 }
 0x223   :  { %358 = vst [vmem:[#allocation8] sm:$0x3] %v353_v1  ;;  %v453_v4 = vpop.f32.mrb[3].mxu1 }
 0x224   :  { %559 = shalt.err (!%p556_p0)
}
 0x225   :  { %s560_s5 = scalar_lea.hbm %s699_s6, 32 }
 0x226   :  { %p561_p1 = scmp.ne.s32.totalorder %s699_s6, %s560_s5  ;;  %p564_p2 = scmp.lt.u32.totalorder %s560_s5, %s699_s6 }
 0x228   :  { %p566_p3 = pnand %p564_p2, %p561_p1 }
 0x22a   :  { %569 = shalt.err (!%p566_p3)
}
 0x22b   :  { %368 = dma.vmem_to_hbm [thread:$0]  %s366_s13, 32, %s699_s6, [#allocation4]  }
 0x22c   :  { %574 = dma.done.wait [#allocation4], 32  }
 0x22d   :  { %575 = vsyncadd [#allocation4], 4294967264 }
 0x22e   :  { %372 = vsyncpa [#allocation3], 1 }
 0x22f   :  { %373 = vsyncpa [#allocation6], 1 }
 0x230   :  { %374 = vsyncpa [#allocation4], 1 }

</bundles_post_ra>
